<compile_context>
chip_gen: v6e
topology: v6e:2x2x1
jax: 0.10.0
libtpu: 0.0.40
codegen_flags: <defaults>
</compile_context>

<pallas_src>
import jax
import jax.numpy as jnp
from jax.experimental import pallas as pl
from jax.experimental.pallas import tpu as pltpu


def _chip_info():
    """Best-effort (vmem_capacity_bytes, is_multi_tensorcore_chip)."""
    vmem_cap = 128 << 20
    try:
        info = pltpu.get_tpu_info()
        vmem_cap = int(getattr(info, "vmem_capacity_bytes", vmem_cap) or vmem_cap)
    except Exception:
        pass
    # Heuristic: only v7x-class chips have <= 64 MiB VMEM per TensorCore, and
    # those chips carry 2 TensorCores -> keep >= 2 parallel grid steps there.
    return vmem_cap, vmem_cap <= (64 << 20)


def _pick_b_tile(batch, c_in, c_mid, hw, item, budget_bytes, need_two_steps):
    """Largest batch tile whose per-step VMEM footprint fits the budget, subject
    to Mosaic block-shape constraints (and >=2 grid steps on multi-TC chips)."""
    const_bytes = 2 * (c_mid * max(9 * c_in, 128) * item      # fused conv weight (double-buffered)
                       + 3 * max(c_mid, 8) * 128 * 4)         # bias / value / policy weights (padded)

    def footprint(bt):
        n = bt * hw
        return (const_bytes
                + 2 * c_in * n * item        # input block (double-buffered)
                + 2 * 9 * n * item           # tiled tap masks (double-buffered)
                + 9 * c_in * n * item        # im2col slab (transient)
                + 3 * c_mid * n * 4          # f32 conv acc + ReLU feat + policy mul (transient)
                + n * bt * 4                 # value pooling matrix (transient)
                + 2 * n * 4                  # policy output block (double-buffered)
                + 2 * max(bt, 8) * 128 * 4)  # value output block (double-buffered, padded)

    bt = batch
    while bt > 1 and footprint(bt) > budget_bytes:
        bt = max(1, bt // 2)
    if need_two_steps and batch > 1:       # only on v7x-like chips (2 TensorCores)
        bt = min(bt, max(1, batch // 2))
    if bt < batch:
        # Partial batch tiles must keep the (b_tile, DV) value block's sublane
        # dim a multiple of 8 and every merged-lane block a multiple of 128.
        bt = (bt // 8) * 8
        while bt >= 8 and (batch % bt or (bt * hw) % 128):
            bt -= 8
        if bt < 8:
            bt = batch                     # fall back to one full-batch block
    return bt


def _make_kernel(W, HW, B_TILE):
    N = B_TILE * HW
    # Static tap list. Tap (ky, kx) reads input (h+ky-1, w+kx-1): flat offset
    # off = (ky-1)*W + (kx-1); shifted[p] = x[p + off] == roll(x, (-off) % N).
    taps = []
    for ky in range(3):
        for kx in range(3):
            off = (ky - 1) * W + (kx - 1)
            taps.append((ky * 3 + kx, (-off) % N))

    def kernel(x_ref, wt_ref, bc_ref, mask_ref, wvs_ref, wp_ref, val_ref, pol_ref):
        # x_ref   : (C_in, N)        feature block, lane axis = merged batch*H*W
        # wt_ref  : (C_mid, 9*C_in)  fused 3x3 conv weight (compute dtype)
        # bc_ref  : (C_mid, 1)       conv bias (f32)
        # mask_ref: (9, N)           per-tap zero-padding masks (compute dtype)
        # wvs_ref : (C_mid, DV)      value weight, pre-scaled by 1/HW (f32)
        # wp_ref  : (C_mid, 1)       policy 1x1-conv weight (f32)
        # val_ref : (B_TILE, DV)     value output tile (f32)
        # pol_ref : (1, N)           policy output row, lane-dense (f32)
        x = x_ref[...]
        masks = mask_ref[...]

        # im2col-lite: 9 shifted + zero-masked tap copies stacked along K.
        # Cross-batch / cross-row wraparound from the roll only hits positions
        # whose padding mask is zero, so the merged lane axis stays correct.
        pieces = []
        for t, shift in taps:
            if shift == 0:
                pieces.append(x)                              # center tap: all-ones mask
            else:
                shifted = pltpu.roll(x, shift=shift, axis=1)
                pieces.append(shifted * masks[t:t + 1, :])
        col = jnp.concatenate(pieces, axis=0)                 # (9*C_in, N)

        # Single fused conv matmul per grid step: K = 9*C_in, N = B_TILE*HW.
        acc = jnp.dot(wt_ref[...], col, preferred_element_type=jnp.float32)   # (C_mid, N)
        feat = jnp.maximum(acc + bc_ref[...], 0.0)            # conv bias + ReLU, f32

        # Policy head (1x1 conv, one output channel): VPU broadcast scale +
        # channel reduction; stored as one lane-dense row per grid step.
        pol_ref[...] = jnp.sum(feat * wp_ref[...], axis=0, keepdims=True).astype(pol_ref.dtype)

        # Value head: per-image spatial pooling via an in-kernel 0/1 segment
        # matrix (one small MXU matmul; 1/HW already folded into wvs), then the
        # tiny (C_mid -> DV) linear; whole (B_TILE, DV) tile stored once.
        pos = jax.lax.broadcasted_iota(jnp.int32, (N, B_TILE), 0)
        seg = jax.lax.broadcasted_iota(jnp.int32, (N, B_TILE), 1)
        pool = jnp.where((pos >= seg * HW) & (pos < (seg + 1) * HW),
                         jnp.float32(1.0), jnp.float32(0.0))
        ch_sum = jnp.dot(feat, pool, preferred_element_type=jnp.float32)       # (C_mid, B_TILE)
        val = jax.lax.dot_general(ch_sum, wvs_ref[...],
                                  (((0,), (0,)), ((), ())),
                                  preferred_element_type=jnp.float32)          # (B_TILE, DV)
        val_ref[...] = val.astype(val_ref.dtype)

    return kernel


def output_head_v1(feature_nchw, conv_weight, conv_bias, linear_weight,
                   policy_weight, *, vmem_budget_bytes=None, conv_compute_dtype=None):
    """Fused OutputHeadV1 forward.

    feature_nchw : (B, C_in, H, W)
    conv_weight  : (C_mid, C_in, 3, 3)   3x3 conv, padding=1 (bias + ReLU)
    conv_bias    : (C_mid,)
    linear_weight: (DV, C_mid)           value-head Linear weight (no bias)
    policy_weight: (1, C_mid, 1, 1)      policy-head 1x1 conv weight (no bias)
    Returns (value (B, DV) f32, policy (B, H, W) f32).
    """
    B, C_in, H, W = feature_nchw.shape
    C_mid = conv_weight.shape[0]
    DV = linear_weight.shape[0]
    HW = H * W

    if conv_compute_dtype is None:
        # bf16 is MXU-native on v5e/v6e/v7x; f32 matmuls need multiple passes.
        conv_compute_dtype = (jnp.bfloat16 if feature_nchw.dtype == jnp.float32
                              else feature_nchw.dtype)
    cdt = jnp.dtype(conv_compute_dtype)

    vmem_cap, multi_tc = _chip_info()
    if vmem_budget_bytes is None:
        vmem_budget_bytes = (24 << 20) if multi_tc else (32 << 20)
    vmem_limit = (48 << 20) if multi_tc else (64 << 20)

    b_tile = _pick_b_tile(B, C_in, C_mid, HW, cdt.itemsize,
                          vmem_budget_bytes, need_two_steps=multi_tc)
    n_blk = b_tile * HW
    grid = (B // b_tile,)

    # Input: NCHW -> (C_in, B*HW). One cheap XLA transpose; inside the kernel
    # the merged batch*spatial axis is the lane dim, so all vector work and the
    # matmul N dimension are lane-dense.
    x2 = (feature_nchw.reshape(B, C_in, HW)
          .transpose(1, 0, 2).reshape(C_in, B * HW).astype(cdt))

    # Host-side one-off parameter prep (tiny).
    # Fused conv weight, tap-major (ky, kx, c) to match the in-kernel concat.
    wmat = jnp.transpose(conv_weight, (0, 2, 3, 1)).reshape(C_mid, 9 * C_in).astype(cdt)
    bc = conv_bias.reshape(C_mid, 1).astype(jnp.float32)
    wvs = (jnp.transpose(linear_weight, (1, 0)) / HW).astype(jnp.float32)   # (C_mid, DV)
    wp = policy_weight.reshape(C_mid, 1).astype(jnp.float32)

    # Per-tap zero-padding masks over the flat H*W axis, tiled to the batch tile
    # (every grid block starts at a batch boundary, so one tiled copy serves all
    # steps; the constant index_map means it is only DMA'd once).
    hh = jax.lax.broadcasted_iota(jnp.int32, (H, W), 0)
    ww = jax.lax.broadcasted_iota(jnp.int32, (H, W), 1)
    mrows = []
    for ky in range(3):
        for kx in range(3):
            dy, dx = ky - 1, kx - 1
            valid = (hh + dy >= 0) & (hh + dy < H) & (ww + dx >= 0) & (ww + dx < W)
            mrows.append(valid.reshape(HW))
    masks = jnp.tile(jnp.stack(mrows, axis=0).astype(cdt), (1, b_tile))     # (9, b_tile*HW)

    kernel = _make_kernel(W, HW, b_tile)

    value, policy = pl.pallas_call(
        kernel,
        out_shape=(
            jax.ShapeDtypeStruct((B, DV), jnp.float32),
            jax.ShapeDtypeStruct((1, B * HW), jnp.float32),
        ),
        grid_spec=pltpu.PrefetchScalarGridSpec(
            num_scalar_prefetch=0,
            grid=grid,
            in_specs=[
                pl.BlockSpec((C_in, n_blk), lambda i: (0, i)),
                pl.BlockSpec((C_mid, 9 * C_in), lambda i: (0, 0)),
                pl.BlockSpec((C_mid, 1), lambda i: (0, 0)),
                pl.BlockSpec((9, n_blk), lambda i: (0, 0)),
                pl.BlockSpec((C_mid, DV), lambda i: (0, 0)),
                pl.BlockSpec((C_mid, 1), lambda i: (0, 0)),
            ],
            out_specs=[
                pl.BlockSpec((b_tile, DV), lambda i: (i, 0)),
                pl.BlockSpec((1, n_blk), lambda i: (0, i)),
            ],
        ),
        compiler_params=pltpu.CompilerParams(
            dimension_semantics=("parallel",),
            vmem_limit_bytes=vmem_limit,
        ),
    )(x2, wmat, bc, masks, wvs, wp)

    # (1, B*HW) -> (B, H, W) is a free view of a contiguous, lane-dense buffer.
    return value, policy.reshape(B, H, W)


def _reference(feature, conv_w, conv_b, lin_w, pol_w):
    hp = jax.lax.Precision.HIGHEST
    mid = jax.lax.conv_general_dilated(
        feature.astype(jnp.float32), conv_w.astype(jnp.float32),
        window_strides=(1, 1), padding=((1, 1), (1, 1)),
        dimension_numbers=("NCHW", "OIHW", "NCHW"), precision=hp)
    mid = jax.nn.relu(mid + conv_b.reshape(1, -1, 1, 1))
    value = jnp.mean(mid, axis=(2, 3))
    value = jnp.matmul(value, jnp.transpose(lin_w, (1, 0)), precision=hp)
    policy = jnp.einsum("bchw,oc->bohw", mid, pol_w.reshape(1, -1), precision=hp)
    return value, jnp.squeeze(policy, axis=1)


if __name__ == "__main__":
    B, C_IN, C_MID, H, W, DV = 2, 4, 8, 16, 16, 3

    key = jax.random.PRNGKey(0)
    kx, kw, kb, kl, kp = jax.random.split(key, 5)
    feature = jax.random.normal(kx, (B, C_IN, H, W), dtype=jnp.float32)
    conv_w = jax.random.normal(kw, (C_MID, C_IN, 3, 3), dtype=jnp.float32) * 0.1
    conv_b = jax.random.normal(kb, (C_MID,), dtype=jnp.float32) * 0.1
    lin_w = jax.random.normal(kl, (DV, C_MID), dtype=jnp.float32) * 0.1
    pol_w = jax.random.normal(kp, (1, C_MID, 1, 1), dtype=jnp.float32) * 0.1

    ref_value, ref_policy = _reference(feature, conv_w, conv_b, lin_w, pol_w)

    # Strict algorithmic check: f32 conv compute.
    fn_f32 = jax.jit(lambda *a: output_head_v1(*a, conv_compute_dtype=jnp.float32))
    v32, p32 = jax.block_until_ready(fn_f32(feature, conv_w, conv_b, lin_w, pol_w))
    assert v32.shape == (B, DV) and p32.shape == (B, H, W)
    assert jnp.allclose(v32, ref_value, atol=2e-3, rtol=2e-3), \
        float(jnp.max(jnp.abs(v32 - ref_value)))
    assert jnp.allclose(p32, ref_policy, atol=2e-3, rtol=2e-3), \
        float(jnp.max(jnp.abs(p32 - ref_policy)))

    # Default (performance) path: bf16 MXU matmul with f32 accumulation.
    fn = jax.jit(output_head_v1)
    value, policy = jax.block_until_ready(fn(feature, conv_w, conv_b, lin_w, pol_w))
    assert value.shape == (B, DV) and policy.shape == (B, H, W)
    assert jnp.allclose(value, ref_value, atol=2e-2, rtol=2e-2), \
        float(jnp.max(jnp.abs(value - ref_value)))
    assert jnp.allclose(policy, ref_policy, atol=2e-2, rtol=2e-2), \
        float(jnp.max(jnp.abs(policy - ref_policy)))

    print("KERNEL_OK")
</pallas_src>

<mosaic_0001>
module attributes {stable_mosaic.version = 11 : i64} {
  func.func @kernel(%arg0: i32, %arg1: memref<4x512xf32, #tpu.memory_space<vmem>>, %arg2: memref<8x36xf32, #tpu.memory_space<vmem>>, %arg3: memref<8x1xf32, #tpu.memory_space<vmem>>, %arg4: memref<9x512xf32, #tpu.memory_space<vmem>>, %arg5: memref<8x3xf32, #tpu.memory_space<vmem>>, %arg6: memref<8x1xf32, #tpu.memory_space<vmem>>, %arg7: memref<2x3xf32, #tpu.memory_space<vmem>>, %arg8: memref<1x512xf32, #tpu.memory_space<vmem>>) attributes {dimension_semantics = [#tpu.dimension_semantics<parallel>], iteration_bounds = array<i64: 1>, scalar_prefetch = 0 : i64, scratch_operands = 0 : i64, tpu.core_type = #tpu.core_type<tc>, window_params = [{transform_indices = @transform_0, window_bounds = array<i64: 4, 512>}, {pipeline_mode = #tpu.pipeline_mode<synchronous>, transform_indices = @transform_1, window_bounds = array<i64: 8, 36>}, {pipeline_mode = #tpu.pipeline_mode<synchronous>, transform_indices = @transform_2, window_bounds = array<i64: 8, 1>}, {pipeline_mode = #tpu.pipeline_mode<synchronous>, transform_indices = @transform_3, window_bounds = array<i64: 9, 512>}, {pipeline_mode = #tpu.pipeline_mode<synchronous>, transform_indices = @transform_4, window_bounds = array<i64: 8, 3>}, {pipeline_mode = #tpu.pipeline_mode<synchronous>, transform_indices = @transform_5, window_bounds = array<i64: 8, 1>}, {transform_indices = @transform_6, window_bounds = array<i64: 2, 3>}, {transform_indices = @transform_7, window_bounds = array<i64: 1, 512>}]} {
    %c0 = arith.constant 0 : index
    %c0_0 = arith.constant 0 : index
    %0 = vector.load %arg1[%c0, %c0_0] : memref<4x512xf32, #tpu.memory_space<vmem>>, vector<4x512xf32>
    %c0_1 = arith.constant 0 : index
    %c0_2 = arith.constant 0 : index
    %1 = vector.load %arg4[%c0_1, %c0_2] : memref<9x512xf32, #tpu.memory_space<vmem>>, vector<9x512xf32>
    %c17_i32 = arith.constant 17 : i32
    %2 = tpu.dynamic_rotate %0 by %c17_i32 dim 1 : vector<4x512xf32>, i32 -> vector<4x512xf32>
    %3 = vector.extract_strided_slice %1 {offsets = [0, 0], sizes = [1, 512], strides = [1, 1]} : vector<9x512xf32> to vector<1x512xf32>
    %4 = vector.broadcast %3 : vector<1x512xf32> to vector<4x512xf32>
    %5 = arith.mulf %2, %4 : vector<4x512xf32>
    %c16_i32 = arith.constant 16 : i32
    %6 = tpu.dynamic_rotate %0 by %c16_i32 dim 1 : vector<4x512xf32>, i32 -> vector<4x512xf32>
    %7 = vector.extract_strided_slice %1 {offsets = [1, 0], sizes = [1, 512], strides = [1, 1]} : vector<9x512xf32> to vector<1x512xf32>
    %8 = vector.broadcast %7 : vector<1x512xf32> to vector<4x512xf32>
    %9 = arith.mulf %6, %8 : vector<4x512xf32>
    %c15_i32 = arith.constant 15 : i32
    %10 = tpu.dynamic_rotate %0 by %c15_i32 dim 1 : vector<4x512xf32>, i32 -> vector<4x512xf32>
    %11 = vector.extract_strided_slice %1 {offsets = [2, 0], sizes = [1, 512], strides = [1, 1]} : vector<9x512xf32> to vector<1x512xf32>
    %12 = vector.broadcast %11 : vector<1x512xf32> to vector<4x512xf32>
    %13 = arith.mulf %10, %12 : vector<4x512xf32>
    %c1_i32 = arith.constant 1 : i32
    %14 = tpu.dynamic_rotate %0 by %c1_i32 dim 1 : vector<4x512xf32>, i32 -> vector<4x512xf32>
    %15 = vector.extract_strided_slice %1 {offsets = [3, 0], sizes = [1, 512], strides = [1, 1]} : vector<9x512xf32> to vector<1x512xf32>
    %16 = vector.broadcast %15 : vector<1x512xf32> to vector<4x512xf32>
    %17 = arith.mulf %14, %16 : vector<4x512xf32>
    %c511_i32 = arith.constant 511 : i32
    %18 = tpu.dynamic_rotate %0 by %c511_i32 dim 1 : vector<4x512xf32>, i32 -> vector<4x512xf32>
    %19 = vector.extract_strided_slice %1 {offsets = [5, 0], sizes = [1, 512], strides = [1, 1]} : vector<9x512xf32> to vector<1x512xf32>
    %20 = vector.broadcast %19 : vector<1x512xf32> to vector<4x512xf32>
    %21 = arith.mulf %18, %20 : vector<4x512xf32>
    %c497_i32 = arith.constant 497 : i32
    %22 = tpu.dynamic_rotate %0 by %c497_i32 dim 1 : vector<4x512xf32>, i32 -> vector<4x512xf32>
    %23 = vector.extract_strided_slice %1 {offsets = [6, 0], sizes = [1, 512], strides = [1, 1]} : vector<9x512xf32> to vector<1x512xf32>
    %24 = vector.broadcast %23 : vector<1x512xf32> to vector<4x512xf32>
    %25 = arith.mulf %22, %24 : vector<4x512xf32>
    %c496_i32 = arith.constant 496 : i32
    %26 = tpu.dynamic_rotate %0 by %c496_i32 dim 1 : vector<4x512xf32>, i32 -> vector<4x512xf32>
    %27 = vector.extract_strided_slice %1 {offsets = [7, 0], sizes = [1, 512], strides = [1, 1]} : vector<9x512xf32> to vector<1x512xf32>
    %28 = vector.broadcast %27 : vector<1x512xf32> to vector<4x512xf32>
    %29 = arith.mulf %26, %28 : vector<4x512xf32>
    %c495_i32 = arith.constant 495 : i32
    %30 = tpu.dynamic_rotate %0 by %c495_i32 dim 1 : vector<4x512xf32>, i32 -> vector<4x512xf32>
    %31 = vector.extract_strided_slice %1 {offsets = [8, 0], sizes = [1, 512], strides = [1, 1]} : vector<9x512xf32> to vector<1x512xf32>
    %32 = vector.broadcast %31 : vector<1x512xf32> to vector<4x512xf32>
    %33 = arith.mulf %30, %32 : vector<4x512xf32>
    %34 = tpu.concatenate %5, %9, %13, %17, %0, %21, %25, %29, %33 in 0 : vector<4x512xf32>, vector<4x512xf32>, vector<4x512xf32>, vector<4x512xf32>, vector<4x512xf32>, vector<4x512xf32>, vector<4x512xf32>, vector<4x512xf32>, vector<4x512xf32> -> vector<36x512xf32>
    %c0_3 = arith.constant 0 : index
    %c0_4 = arith.constant 0 : index
    %35 = vector.load %arg2[%c0_3, %c0_4] : memref<8x36xf32, #tpu.memory_space<vmem>>, vector<8x36xf32>
    %cst = arith.constant dense<0.000000e+00> : vector<8x512xf32>
    %36 = tpu.matmul %35, %34, %cst {dimension_numbers = #tpu.dot_dimension_numbers<[1], [0], [0], [1], [0, 0, 1, 1], [], []>} : vector<8x36xf32>, vector<36x512xf32>, vector<8x512xf32> -> vector<8x512xf32>
    %c0_5 = arith.constant 0 : index
    %c0_6 = arith.constant 0 : index
    %37 = vector.load %arg3[%c0_5, %c0_6] : memref<8x1xf32, #tpu.memory_space<vmem>>, vector<8x1xf32>
    %38 = vector.broadcast %37 : vector<8x1xf32> to vector<8x512xf32>
    %39 = arith.addf %36, %38 : vector<8x512xf32>
    %cst_7 = arith.constant 0.000000e+00 : f32
    %40 = vector.broadcast %cst_7 : f32 to vector<8x512xf32>
    %41 = arith.maximumf %39, %40 : vector<8x512xf32>
    %c0_8 = arith.constant 0 : index
    %c0_9 = arith.constant 0 : index
    %42 = vector.load %arg6[%c0_8, %c0_9] : memref<8x1xf32, #tpu.memory_space<vmem>>, vector<8x1xf32>
    %43 = vector.broadcast %42 : vector<8x1xf32> to vector<8x512xf32>
    %44 = arith.mulf %41, %43 : vector<8x512xf32>
    %cst_10 = arith.constant dense<0.000000e+00> : vector<512xf32>
    %45 = vector.multi_reduction <add>, %44, %cst_10 [0] : vector<8x512xf32> to vector<512xf32>
    %46 = vector.shape_cast %45 : vector<512xf32> to vector<1x512xf32>
    %c0_11 = arith.constant 0 : index
    %c0_12 = arith.constant 0 : index
    %47 = vector.load %arg8[%c0_11, %c0_12] : memref<1x512xf32, #tpu.memory_space<vmem>>, vector<1x512xf32>
    tpu.vector_store %arg8[%c0_11, %c0_12], %46 {strides = array<i32>} : memref<1x512xf32, #tpu.memory_space<vmem>>, vector<1x512xf32>,
    %48 = tpu.iota {dimensions = array<i32: 0>} : vector<512x2xi32>
    %49 = tpu.iota {dimensions = array<i32: 1>} : vector<512x2xi32>
    %c256_i32 = arith.constant 256 : i32
    %50 = vector.broadcast %c256_i32 : i32 to vector<512x2xi32>
    %51 = arith.muli %49, %50 : vector<512x2xi32>
    %52 = arith.cmpi sge, %48, %51 : vector<512x2xi32>
    %c1_i32_13 = arith.constant 1 : i32
    %53 = vector.broadcast %c1_i32_13 : i32 to vector<512x2xi32>
    %54 = arith.addi %49, %53 : vector<512x2xi32>
    %c256_i32_14 = arith.constant 256 : i32
    %55 = vector.broadcast %c256_i32_14 : i32 to vector<512x2xi32>
    %56 = arith.muli %54, %55 : vector<512x2xi32>
    %57 = arith.cmpi slt, %48, %56 : vector<512x2xi32>
    %58 = arith.andi %52, %57 : vector<512x2xi1>
    %cst_15 = arith.constant 1.000000e+00 : f32
    %cst_16 = arith.constant 0.000000e+00 : f32
    %59 = vector.broadcast %cst_15 : f32 to vector<512x2xf32>
    %60 = vector.broadcast %cst_16 : f32 to vector<512x2xf32>
    %61 = arith.select %58, %59, %60 : vector<512x2xi1>, vector<512x2xf32>
    %cst_17 = arith.constant dense<0.000000e+00> : vector<8x2xf32>
    %62 = tpu.matmul %41, %61, %cst_17 {dimension_numbers = #tpu.dot_dimension_numbers<[1], [0], [0], [1], [0, 0, 1, 1], [], []>} : vector<8x512xf32>, vector<512x2xf32>, vector<8x2xf32> -> vector<8x2xf32>
    %c0_18 = arith.constant 0 : index
    %c0_19 = arith.constant 0 : index
    %63 = vector.load %arg5[%c0_18, %c0_19] : memref<8x3xf32, #tpu.memory_space<vmem>>, vector<8x3xf32>
    %cst_20 = arith.constant dense<0.000000e+00> : vector<2x3xf32>
    %64 = tpu.matmul %62, %63, %cst_20 {dimension_numbers = #tpu.dot_dimension_numbers<[0], [0], [1], [1], [0, 1, 1, 1], [], []>} : vector<8x2xf32>, vector<8x3xf32>, vector<2x3xf32> -> vector<2x3xf32>
    %c0_21 = arith.constant 0 : index
    %c0_22 = arith.constant 0 : index
    %65 = vector.load %arg7[%c0_21, %c0_22] : memref<2x3xf32, #tpu.memory_space<vmem>>, vector<2x3xf32>
    tpu.vector_store %arg7[%c0_21, %c0_22], %64 {strides = array<i32>} : memref<2x3xf32, #tpu.memory_space<vmem>>, vector<2x3xf32>,
    return
  }
  func.func @transform_0(%arg0: i32) -> (i32, i32) {
    %c0_i32 = arith.constant 0 : i32
    %c0_i32_0 = arith.constant 0 : i32
    return %c0_i32, %arg0 : i32, i32
  }
  func.func @transform_1(%arg0: i32) -> (i32, i32) {
    %c0_i32 = arith.constant 0 : i32
    %c0_i32_0 = arith.constant 0 : i32
    %c0_i32_1 = arith.constant 0 : i32
    return %c0_i32, %c0_i32_0 : i32, i32
  }
  func.func @transform_2(%arg0: i32) -> (i32, i32) {
    %c0_i32 = arith.constant 0 : i32
    %c0_i32_0 = arith.constant 0 : i32
    %c0_i32_1 = arith.constant 0 : i32
    return %c0_i32, %c0_i32_0 : i32, i32
  }
  func.func @transform_3(%arg0: i32) -> (i32, i32) {
    %c0_i32 = arith.constant 0 : i32
    %c0_i32_0 = arith.constant 0 : i32
    %c0_i32_1 = arith.constant 0 : i32
    return %c0_i32, %c0_i32_0 : i32, i32
  }
  func.func @transform_4(%arg0: i32) -> (i32, i32) {
    %c0_i32 = arith.constant 0 : i32
    %c0_i32_0 = arith.constant 0 : i32
    %c0_i32_1 = arith.constant 0 : i32
    return %c0_i32, %c0_i32_0 : i32, i32
  }
  func.func @transform_5(%arg0: i32) -> (i32, i32) {
    %c0_i32 = arith.constant 0 : i32
    %c0_i32_0 = arith.constant 0 : i32
    %c0_i32_1 = arith.constant 0 : i32
    return %c0_i32, %c0_i32_0 : i32, i32
  }
  func.func @transform_6(%arg0: i32) -> (i32, i32) {
    %c0_i32 = arith.constant 0 : i32
    %c0_i32_0 = arith.constant 0 : i32
    return %arg0, %c0_i32 : i32, i32
  }
  func.func @transform_7(%arg0: i32) -> (i32, i32) {
    %c0_i32 = arith.constant 0 : i32
    %c0_i32_0 = arith.constant 0 : i32
    return %c0_i32, %arg0 : i32, i32
  }
}

</mosaic_0001>

<bundles_post_ra>
// kernel: _lambda_.1
= control target key start
LH: loop header
LB: loop body
LE: loop exit
PB: predicated region body
PF: predicated region fallthrough
CT: control target
= control target key end

     0   :  { %s1392_s28 = smov 112   ;;  %s2629_s0 = inlined_call_operand.vmem [shape: f32[4,512], index: 0, kind: input, shape index: {}]   ;;  %s2630_s1 = inlined_call_operand.vmem [shape: f32[8,36], index: 1, kind: input, shape index: {}]   ;;  %s2631_s2 = inlined_call_operand.vmem [shape: f32[8,1], index: 2, kind: input, shape index: {}]   ;;  %s2632_s3 = inlined_call_operand.vmem [shape: f32[9,512], index: 3, kind: input, shape index: {}]   ;;  %s2633_s4 = inlined_call_operand.vmem [shape: f32[8,3], index: 4, kind: input, shape index: {}]   ;;  %s2634_s5 = inlined_call_operand.vmem [shape: f32[8,1], index: 5, kind: input, shape index: {}]   ;;  %s2635_s6 = inlined_call_operand.hbm [shape: f32[2,3], index: 6, kind: output, shape index: {0}]   ;;  %s2636_s7 = inlined_call_operand.vmem [shape: f32[1,512], index: 7, kind: output, shape index: {1}]  }
   0x1   :  { %v1449_v0 = vld [vmem:[%s2629_s0 + $0x8] sm:$0xff]  ;;  %v1454_v1 = vld [vmem:[%s2629_s0] sm:$0xff] }
   0x2   :  { %246 = vrot.lane.b32.xlu1 %v1449_v0, %s1392_s28  ;;  %242 = vrot.lane.b32.xlu0 %v1454_v1, %s1392_s28  ;;  %v1460_v2 = vcombine.high %v1449_v0, %v1449_v0  ;;  %v1464_v3 = vcombine.high %v1454_v1, %v1454_v1 }
   0x6   :  { %248 = vrot.lane.b32.xlu1 %v1460_v2, %s1392_s28  ;;  %244 = vrot.lane.b32.xlu0 %v1464_v3, %s1392_s28 }
   0x7   :  { %13 = vsyncpa [#allocation3], 0  ;;  %s1393_s0 = smov 111   ;;  %s1394_s29 = smov 127   ;;  %v2638_v4 = vmov 0.0   ;;  %v1400_v5 = vmov 0   ;;  %v2637_v12 = vlaneseq }
   0x8   :  { %s1395_s30 = smov 113   ;;  %s1396_s8 = smov 1   ;;  %460 = vmatprep.mubr.f32.mxu0 %v2638_v4  ;;  %531 = vmatprep.mubr.f32.mxu1 %v2638_v4  ;;  %v374_v6 = vld [vmem:[%s2631_s2] sm:$0xff]  ;;  %v1203_v17 = vld [vmem:[%s2632_s3 + $0x30] ss:$0 sm:$0xff]  ;;  %vm2640_vm1 = vcmask 1043456  }
   0x9   :  { %s1397_s9 = smov 16   ;;  %s1398_s10 = smov 15   ;;  %1367 = vset.pattern.permute.xlu0 %v1400_v5  ;;  %v542_v7 = vld [vmem:[%s2634_s5] sm:$0xff]  ;;  %v1505_v13 = vand.u32 127, %v2637_v12  ;;  %v1509_v16 = vshrl.u32 %v2637_v12, 7  ;;  %v1527_v32 = vld [vmem:[%s2632_s3 + $0x10] sm:$0xff] }
   0xa   :  { %277 = vrot.lane.b32.xlu1 %v1464_v3, %s1393_s0  ;;  %275 = vrot.lane.b32.xlu0 %v1454_v1, %s1393_s0  ;;  %s1401_s11 = smov 17   ;;  %v1202_v18 = vld [vmem:[%s2632_s3 + $0x28] ss:$0 sm:$0xff]  ;;  %v1204_v19 = vld [vmem:[%s2632_s3 + $0x38] ss:$0 sm:$0xff] }
   0xb   :  { %vm283_vm0 = vcmp.lt.s32.totalorder %v1505_v13, 111  ;;  %v1201_v20 = vld [vmem:[%s2632_s3 + $0x20] ss:$0 sm:$0xff]  ;;  %v257_v30 = vsub.s32 7, %v1509_v16  ;;  %v1532_v33 = vld [vmem:[%s2632_s3 + $0x18] sm:$0xff]  ;;  %vm250_vm2 = vcmp.lt.s32.totalorder %v1505_v13, 112 }
   0xc   :  { %v1540_v36 = vld [vmem:[%s2632_s3 + $0x8] sm:$0xff]  ;;  %v1547_v37 = vld [vmem:[%s2632_s3] sm:$0xff]  ;;  %v191_v38 = vsub.s32 5, %v1509_v16  ;;  %vm184_vm3 = vcmp.lt.s32.totalorder %v1505_v13, 127  ;;  %v224_v50 = vsub.s32 6, %v1509_v16  ;;  %vm217_vm4 = vcmp.lt.s32.totalorder %v1505_v13, 113 }
   0xd   :  { %v266_v39 = vrot.slane %v1527_v32, %v257_v30  ;;  %v270_v40 = vrot.slane %v1532_v33, %v257_v30  ;;  %v262_v43 = vrot.slane %v1540_v36, %v257_v30  ;;  %v258_v47 = vrot.slane %v1547_v37, %v257_v30 }
   0xe   :  { %281 = vrot.lane.b32.xlu1 %v1460_v2, %s1393_s0  ;;  %279 = vrot.lane.b32.xlu0 %v1449_v0, %s1393_s0  ;;  %v204_v44 = vrot.slane %v1532_v33, %v191_v38  ;;  %v192_v51 = vrot.slane %v1547_v37, %v191_v38  ;;  %v196_v52 = vrot.slane %v1540_v36, %v191_v38  ;;  %vm151_vm5 = vcmp.lt.s32.totalorder %v1505_v13, 1 }
   0xf   :  { %v200_v53 = vrot.slane %v1527_v32, %v191_v38  ;;  %v225_v5 = vrot.slane %v1547_v37, %v224_v50  ;;  %vm85_vm6 = vcmp.lt.s32.totalorder %v1505_v13, 16  ;;  %vm118_vm7 = vcmp.lt.s32.totalorder %v1505_v13, 15 }
  0x10   :  { %vm52_vm10 = vcmp.lt.s32.totalorder %v1505_v13, 17 }
  0x12   :  { %178 = vrot.lane.b32.xlu1 %v1464_v3, %s1394_s29  ;;  %176 = vrot.lane.b32.xlu0 %v1454_v1, %s1394_s29 }
  0x16   :  { %182 = vrot.lane.b32.xlu1 %v1460_v2, %s1394_s29  ;;  %180 = vrot.lane.b32.xlu0 %v1449_v0, %s1394_s29 }
  0x1a   :  { %211 = vrot.lane.b32.xlu1 %v1464_v3, %s1395_s30  ;;  %209 = vrot.lane.b32.xlu0 %v1454_v1, %s1395_s30 }
  0x1e   :  { %215 = vrot.lane.b32.xlu1 %v1460_v2, %s1395_s30  ;;  %213 = vrot.lane.b32.xlu0 %v1449_v0, %s1395_s30 }
  0x22   :  { %145 = vrot.lane.b32.xlu1 %v1464_v3, %s1396_s8  ;;  %143 = vrot.lane.b32.xlu0 %v1454_v1, %s1396_s8 }
  0x26   :  { %149 = vrot.lane.b32.xlu1 %v1460_v2, %s1396_s8  ;;  %147 = vrot.lane.b32.xlu0 %v1449_v0, %s1396_s8 }
  0x2a   :  { %79 = vrot.lane.b32.xlu1 %v1464_v3, %s1397_s9  ;;  %77 = vrot.lane.b32.xlu0 %v1454_v1, %s1397_s9 }
  0x2e   :  { %83 = vrot.lane.b32.xlu1 %v1460_v2, %s1397_s9  ;;  %81 = vrot.lane.b32.xlu0 %v1449_v0, %s1397_s9 }
  0x32   :  { %112 = vrot.lane.b32.xlu1 %v1464_v3, %s1398_s10  ;;  %110 = vrot.lane.b32.xlu0 %v1454_v1, %s1398_s10 }
  0x36   :  { %116 = vrot.lane.b32.xlu1 %v1460_v2, %s1398_s10  ;;  %114 = vrot.lane.b32.xlu0 %v1449_v0, %s1398_s10 }
  0x3a   :  { %44 = vrot.lane.b32.xlu1 %v1464_v3, %s1401_s11  ;;  %42 = vrot.lane.b32.xlu0 %v1454_v1, %s1401_s11 }
  0x3e   :  { %48 = vrot.lane.b32.xlu1 %v1460_v2, %s1401_s11  ;;  %46 = vrot.lane.b32.xlu0 %v1449_v0, %s1401_s11 }
  0x42   :  { %377 = vperm.xlu0 %1367, %v374_v6   ;;  %v237_v6 = vrot.slane %v1532_v33, %v224_v50 }
  0x46   :  { %545 = vperm.xlu0 %1367, %v542_v7  }
  0x74   :  { %v247_v8 = vpop.permute.xlu1 %246  ;;  %v243_v9 = vpop.permute.xlu0 %242 }
  0x78   :  { %v249_v10 = vpop.permute.xlu1 %248  ;;  %v245_v11 = vpop.permute.xlu0 %244 }
  0x79   :  { %v251_v41 = vsel %vm250_vm2, %v247_v8, %v249_v10  ;;  %v254_v42 = vsel %vm250_vm2, %v249_v10, %v243_v9  ;;  %v252_v48 = vsel %vm250_vm2, %v245_v11, %v247_v8  ;;  %v253_v56 = vsel %vm250_vm2, %v243_v9, %v245_v11 }
  0x7a   :  { %v273_v54 = vmul.f32 %v266_v39, %v251_v41  ;;  %v274_v55 = vmul.f32 %v270_v40, %v254_v42  ;;  %v272_v58 = vmul.f32 %v262_v43, %v252_v48  ;;  %v229_v9 = vrot.slane %v1540_v36, %v224_v50 }
  0x7b   :  { %v233_v10 = vrot.slane %v1527_v32, %v224_v50  ;;  %v271_v11 = vmul.f32 %v258_v47, %v253_v56  ;;  %v740_v43 = vadd.s32 1, %v1505_v13  ;;  %v1606_v50 = vsub.s32 1, %v1509_v16 }
  0x7c   :  { %v278_v14 = vpop.permute.xlu1 %277  ;;  %v276_v15 = vpop.permute.xlu0 %275 }
  0x7d   :  { %v286_v21 = vsel %vm283_vm0, %v276_v15, %v278_v14 }
  0x7e   :  { %v304_v31 = vmul.f32 %v1201_v20, %v286_v21 }
  0x80   :  { %v282_v22 = vpop.permute.xlu1 %281  ;;  %v280_v23 = vpop.permute.xlu0 %279 }
  0x81   :  { %v287_v24 = vsel %vm283_vm0, %v282_v22, %v276_v15  ;;  %v284_v25 = vsel %vm283_vm0, %v280_v23, %v282_v22  ;;  %v285_v26 = vsel %vm283_vm0, %v278_v14, %v280_v23 }
  0x82   :  { %v306_v27 = vmul.f32 %v1203_v17, %v284_v25  ;;  %v305_v28 = vmul.f32 %v1202_v18, %v285_v26  ;;  %v307_v29 = vmul.f32 %v1204_v19, %v287_v24  ;;  %v350_v17 = vrot.slane %v273_v54, 4 }
  0x83   :  { %v351_v18 = vrot.slane %v274_v55, 4  ;;  %v349_v19 = vrot.slane %v272_v58, 4  ;;  %v1624_v55 = vsub.s32 0, %v1509_v16  ;;  %v93_v58 = vrot.slane %v1547_v37, %v1606_v50 }
  0x84   :  { %v179_v34 = vpop.permute.xlu1 %178  ;;  %1205 = vmatprep.subr.msk.mxu0 %vm2640_vm1, %v305_v28  ;;  %1208 = vmatprep.subr.msk.mxu1 %vm2640_vm1, %v307_v29  ;;  %v177_v35 = vpop.permute.xlu0 %176 }
  0x85   :  { %1206 = vmatpush1.msk.msra.mxu0 %vm2640_vm1, %v304_v31  ;;  %1209 = vmatpush1.msk.msra.mxu1 %vm2640_vm1, %v306_v27  ;;  %v187_v59 = vsel %vm184_vm3, %v177_v35, %v179_v34  ;;  %v348_v31 = vrot.slane %v271_v11, 4  ;;  %v1658_v11 = vadd.s32 120, %v1509_v16 }
  0x86   :  { %v205_v14 = vmul.f32 %v192_v51, %v187_v59 }
  0x88   :  { %v183_v45 = vpop.permute.xlu1 %182  ;;  %v181_v46 = vpop.permute.xlu0 %180 }
  0x89   :  { %v188_v49 = vsel %vm184_vm3, %v183_v45, %v177_v35  ;;  %v186_v57 = vsel %vm184_vm3, %v179_v34, %v181_v46  ;;  %v185_v61 = vsel %vm184_vm3, %v181_v46, %v183_v45  ;;  %v336_v34 = vrot.slane %v205_v14, 4 }
  0x8a   :  { %v208_v60 = vmul.f32 %v204_v44, %v188_v49  ;;  %v206_v7 = vmul.f32 %v196_v52, %v186_v57  ;;  %v207_v15 = vmul.f32 %v200_v53, %v185_v61  ;;  %v1595_v45 = vsub.s32 3, %v1509_v16 }
  0x8b   :  { %v365_v48 = vsel %vm2640_vm1, %v1454_v1, %v336_v34  ;;  %v1614_v53 = vmul.u32 256, %v740_v43  ;;  %v97_v57 = vrot.slane %v1540_v36, %v1606_v50  ;;  %v101_v61 = vrot.slane %v1527_v32, %v1606_v50 }
  0x8c   :  { %v212_v62 = vpop.permute.xlu1 %211  ;;  %v210_v63 = vpop.permute.xlu0 %209  ;;  %v339_v20 = vrot.slane %v208_v60, 4  ;;  %v337_v27 = vrot.slane %v206_v7, 4  ;;  %v338_v35 = vrot.slane %v207_v15, 4  ;;  %v159_v1 = vrot.slane %v1547_v37, %v1595_v45 }
  0x8d   :  { %v220_v8 = vsel %vm217_vm4, %v210_v63, %v212_v62  ;;  %v167_v54 = vrot.slane %v1527_v32, %v1595_v45  ;;  %v171_v56 = vrot.slane %v1532_v33, %v1595_v45  ;;  %v1661_v14 = vadd.s32 504, %v1509_v16 }
  0x8e   :  { %v238_v23 = vmul.f32 %v225_v5, %v220_v8  ;;  %v366_v46 = vsel %vm2640_vm1, %v1464_v3, %v337_v27  ;;  %v368_v47 = vsel %vm2640_vm1, %v1460_v2, %v339_v20  ;;  %v367_v49 = vsel %vm2640_vm1, %v1449_v0, %v338_v35 }
  0x8f   :  { %v1609_v3 = vsub.s32 2, %v1509_v16  ;;  %v1612_v2 = vmul.u32 256, %v1505_v13  ;;  %v163_v0 = vrot.slane %v1540_v36, %v1595_v45  ;;  %v1651_v8 = vadd.s32 248, %v1509_v16 }
  0x90   :  { %v216_v21 = vpop.permute.xlu1 %215  ;;  %v214_v22 = vpop.permute.xlu0 %213  ;;  %v369_v44 = vsel %vm2640_vm1, %v238_v23, %v348_v31  ;;  %v72_v23 = vrot.slane %v1532_v33, %v1624_v55  ;;  %vm757_vm12 = vcmp.lt.s32.totalorder %v1658_v11, %v1614_v53  ;;  %vm805_vm14 = vcmp.lt.s32.totalorder %v1661_v14, %v1614_v53 }
  0x91   :  { %v221_v24 = vsel %vm217_vm4, %v216_v21, %v210_v63  ;;  %v218_v25 = vsel %vm217_vm4, %v214_v22, %v216_v21  ;;  %v219_v26 = vsel %vm217_vm4, %v212_v62, %v214_v22  ;;  %v105_v62 = vrot.slane %v1532_v33, %v1606_v50 }
  0x92   :  { %v241_v28 = vmul.f32 %v237_v6, %v221_v24  ;;  %v239_v29 = vmul.f32 %v229_v9, %v219_v26  ;;  %v240_v30 = vmul.f32 %v233_v10, %v218_v25  ;;  %v130_v63 = vrot.slane %v1540_v36, %v1609_v3 }
  0x93   :  { %v126_v5 = vrot.slane %v1547_v37, %v1609_v3  ;;  %v134_v6 = vrot.slane %v1527_v32, %v1609_v3  ;;  %v138_v7 = vrot.slane %v1532_v33, %v1609_v3  ;;  %v64_v9 = vrot.slane %v1540_v36, %v1624_v55  ;;  %v373_v33 = vld [vmem:[%s2630_s1] sm:$0xff] }
  0x94   :  { %v146_v38 = vpop.permute.xlu1 %145  ;;  %v144_v39 = vpop.permute.xlu0 %143  ;;  %v370_v40 = vsel %vm2640_vm1, %v239_v29, %v349_v19  ;;  %v372_v41 = vsel %vm2640_vm1, %v241_v28, %v351_v18  ;;  %v371_v42 = vsel %vm2640_vm1, %v240_v30, %v350_v17  ;;  %v60_v10 = vrot.slane %v1547_v37, %v1624_v55 }
  0x95   :  { %420 = vmatprep.subr.mxu0 %v370_v40  ;;  %491 = vmatprep.subr.mxu1 %v372_v41  ;;  %v154_v15 = vsel %vm151_vm5, %v144_v39, %v146_v38  ;;  %v68_v17 = vrot.slane %v1527_v32, %v1624_v55  ;;  %v1668_v18 = vadd.s32 240, %v1509_v16  ;;  %v1671_v19 = vadd.s32 376, %v1509_v16 }
  0x96   :  { %421 = vmatpush1.msra.mxu0 %v369_v44  ;;  %492 = vmatpush1.msra.mxu1 %v371_v42  ;;  %v1682_v24 = vadd.s32 112, %v1509_v16  ;;  %v1685_v25 = vadd.s32 496, %v1509_v16  ;;  %vm707_vm8 = vcmp.ge.s32.totalorder %v1651_v8, %v1612_v2  ;;  %vm773_vm9 = vcmp.lt.s32.totalorder %v1651_v8, %v1614_v53 }
  0x97   :  { %422 = vmatprep.subr.mxu0 %v366_v46  ;;  %493 = vmatprep.subr.mxu1 %v368_v47  ;;  %v1696_v28 = vadd.s32 232, %v1509_v16  ;;  %v1699_v29 = vadd.s32 368, %v1509_v16  ;;  %v173_v30 = vmul.f32 %v163_v0, %v154_v15  ;;  %vm691_vm11 = vcmp.ge.s32.totalorder %v1658_v11, %v1612_v2 }
  0x98   :  { %v150_v51 = vpop.permute.xlu1 %149  ;;  %423 = vmatpush1.msra.mxu0 %v365_v48  ;;  %494 = vmatpush1.msra.mxu1 %v367_v49  ;;  %v148_v52 = vpop.permute.xlu0 %147  ;;  %vm739_vm13 = vcmp.ge.s32.totalorder %v1661_v14, %v1612_v2  ;;  %v1711_v31 = vadd.s32 104, %v1509_v16  ;;  %v1714_v34 = vadd.s32 488, %v1509_v16  ;;  %v1717_v35 = vadd.s32 224, %v1509_v16 }
  0x99   :  { %v155_v20 = vsel %vm151_vm5, %v150_v51, %v144_v39  ;;  %v152_v26 = vsel %vm151_vm5, %v148_v52, %v150_v51  ;;  %v153_v27 = vsel %vm151_vm5, %v146_v38, %v148_v52  ;;  %vm772_vm0 = vcmp.lt.s32.totalorder %v1668_v18, %v1614_v53 }
  0x9a   :  { %v1719_v38 = vmul.f32 %v159_v1, %v155_v20  ;;  %v1730_v39 = vadd.s32 360, %v1509_v16  ;;  %v1733_v40 = vadd.s32 96, %v1509_v16  ;;  %v1736_v41 = vadd.s32 480, %v1509_v16 }
  0x9b   :  { %v1738_v42 = vmul.f32 %v167_v54, %v153_v27  ;;  %v1740_v43 = vmul.f32 %v171_v56, %v152_v26  ;;  %v1751_v46 = vadd.s32 216, %v1509_v16  ;;  %v1754_v47 = vadd.s32 352, %v1509_v16 }
  0x9c   :  { %v1633_v59 = vpop.permute.xlu1 %79  ;;  %v1635_v60 = vpop.permute.xlu0 %77  ;;  %v1771_v51 = vadd.s32 88, %v1509_v16  ;;  %v1774_v52 = vadd.s32 472, %v1509_v16  ;;  %v325_v0 = vrot.slane %v173_v30, 4  ;;  %v1785_v54 = vadd.s32 208, %v1509_v16 }
  0x9d   :  { %v88_v48 = vsel %vm85_vm6, %v1635_v60, %v1633_v59  ;;  %v1788_v56 = vadd.s32 344, %v1509_v16  ;;  %v1800_v15 = vadd.s32 80, %v1509_v16  ;;  %v1803_v20 = vadd.s32 464, %v1509_v16 }
  0x9e   :  { %v1806_v26 = vadd.s32 200, %v1509_v16  ;;  %v326_v27 = vrot.slane %v1738_v42, 4  ;;  %v327_v30 = vrot.slane %v1740_v43, 4  ;;  %vm2654_vm15 = vcmp.lt.s32.totalorder %v1682_v24, %v1614_v53 }
  0x9f   :  { %vm2667_vm5 = vcmp.ge.s32.totalorder %v1699_v29, %v1612_v2  ;;  %vm2675_vm2 = vcmp.ge.s32.totalorder %v1714_v34, %v1612_v2  ;;  %v2676_v13 = vmov 0  ;;  %v2684_v32 = vmov 0 }
  0xa0   :  { %v1675_v21 = vpop.permute.xlu1 %83  ;;  %v1677_v22 = vpop.permute.xlu0 %81  ;;  %v2688_v37 = vmov 0  ;;  %v2692_v55 = vmov 0  ;;  %v2757_v8 = vmov 0  ;;  %v2773_v14 = vmov 0 }
  0xa1   :  { %v632_v36 = vadd.s32 168, %v1509_v16  ;;  %v2779_v50 = vmov 0 }
  0xa4   :  { %v113_v44 = vpop.permute.xlu1 %112  ;;  %v111_v45 = vpop.permute.xlu0 %110 }
  0xa5   :  { %v121_v49 = vsel %vm118_vm7, %v111_v45, %v113_v44 }
  0xa6   :  { %v140_v1 = vmul.f32 %v130_v63, %v121_v49  ;;  %v324_v63 = vrot.slane %v1719_v38, 4  ;;  %v1813_v38 = vmul.f32 %v97_v57, %v88_v48  ;;  %v89_v57 = vsel %vm85_vm6, %v1675_v21, %v1635_v60 }
  0xa7   :  { %v87_v60 = vsel %vm85_vm6, %v1633_v59, %v1677_v22  ;;  %v86_v59 = vsel %vm85_vm6, %v1677_v22, %v1675_v21  ;;  %v106_v3 = vmul.f32 %v93_v58, %v89_v57  ;;  %vm1887_vm6 = vmand %vm707_vm8, %vm773_vm9  ;;  %v2006_v57 = vadd.s32 192, %v1509_v16 }
  0xa8   :  { %v117_v49 = vpop.permute.xlu1 %116  ;;  %v115_v12 = vpop.permute.xlu0 %114  ;;  %v362_v4 = vsel %vm2640_vm1, %v140_v1, %v325_v0  ;;  %v108_v58 = vmul.f32 %v101_v61, %v87_v60  ;;  %vm1906_vm8 = vmand %vm691_vm11, %vm757_vm12  ;;  %v313_v1 = vrot.slane %v1813_v38, 4  ;;  %v109_v11 = vmul.f32 %v105_v62, %v86_v59 }
  0xa9   :  { %v122_v42 = vsel %vm118_vm7, %v117_v49, %v111_v45  ;;  %v119_v43 = vsel %vm118_vm7, %v115_v12, %v117_v49  ;;  %v120_v48 = vsel %vm118_vm7, %v113_v44, %v115_v12  ;;  %424 = vmatprep.subr.mxu0 %v362_v4  ;;  %vm1916_vm9 = vmand %vm739_vm13, %vm805_vm14  ;;  %vm2647_vm11 = vcmp.ge.s32.totalorder %v1668_v18, %v1612_v2 }
  0xaa   :  { %v139_v4 = vmul.f32 %v126_v5, %v122_v42  ;;  %v141_v12 = vmul.f32 %v134_v6, %v120_v48  ;;  %v142_v44 = vmul.f32 %v138_v7, %v119_v43  ;;  %vm1935_vm12 = vmand %vm2647_vm11, %vm772_vm0  ;;  %vm2650_vm13 = vcmp.lt.s32.totalorder %v1671_v19, %v1614_v53 }
  0xab   :  { %vm2651_vm14 = vcmp.ge.s32.totalorder %v1671_v19, %v1612_v2  ;;  %vm2655_vm0 = vcmp.ge.s32.totalorder %v1682_v24, %v1612_v2  ;;  %vm2658_vm7 = vcmp.lt.s32.totalorder %v1685_v25, %v1614_v53  ;;  %v1979_v18 = vadd.s32 72, %v1509_v16 }
  0xac   :  { %v45_v5 = vpop.permute.xlu1 %44  ;;  %v43_v6 = vpop.permute.xlu0 %42  ;;  %v361_v7 = vsel %vm2640_vm1, %v139_v4, %v324_v63  ;;  %v364_v21 = vsel %vm2640_vm1, %v142_v44, %v327_v30  ;;  %v363_v22 = vsel %vm2640_vm1, %v141_v12, %v326_v27  ;;  %vm1945_vm4 = vmand %vm2651_vm14, %vm2650_vm13  ;;  %vm2659_vm13 = vcmp.ge.s32.totalorder %v1685_v25, %v1612_v2 }
  0xad   :  { %v55_v0 = vsel %vm52_vm10, %v43_v6, %v45_v5  ;;  %425 = vmatpush1.msra.mxu0 %v361_v7  ;;  %495 = vmatprep.subr.mxu1 %v364_v21  ;;  %vm1957_vm11 = vmand %vm2655_vm0, %vm2654_vm15  ;;  %v312_v19 = vrot.slane %v106_v3, 4  ;;  %vm2662_vm15 = vcmp.lt.s32.totalorder %v1696_v28, %v1614_v53  ;;  %v2668_v38 = vmov 0 }
  0xae   :  { %v74_v63 = vmul.f32 %v64_v9, %v55_v0  ;;  %496 = vmatpush1.msra.mxu1 %v363_v22  ;;  %vm1967_vm14 = vmand %vm2659_vm13, %vm2658_vm7  ;;  %v1976_v9 = vadd.s32 336, %v1509_v16  ;;  %vm2663_vm7 = vcmp.ge.s32.totalorder %v1696_v28, %v1612_v2  ;;  %vm2666_vm13 = vcmp.lt.s32.totalorder %v1699_v29, %v1614_v53 }
  0xaf   :  { %vm1988_vm0 = vmand %vm2663_vm7, %vm2662_vm15  ;;  %v2003_v49 = vadd.s32 456, %v1509_v16  ;;  %v314_v28 = vrot.slane %v108_v58, 4  ;;  %vm2671_vm15 = vcmp.ge.s32.totalorder %v1711_v31, %v1612_v2  ;;  %v2672_v48 = vmov 0 }
  0xb0   :  { %v49_v24 = vpop.permute.xlu1 %48  ;;  %v47_v27 = vpop.permute.xlu0 %46  ;;  %v358_v25 = vsel %vm2640_vm1, %v74_v63, %v313_v1  ;;  %vm1998_vm3 = vmand %vm2667_vm5, %vm2666_vm13  ;;  %vm2670_vm5 = vcmp.lt.s32.totalorder %v1711_v31, %v1614_v53  ;;  %vm2674_vm13 = vcmp.lt.s32.totalorder %v1714_v34, %v1614_v53  ;;  %v315_v60 = vrot.slane %v109_v11, 4 }
  0xb1   :  { %v2669_v38 = vsel %vm1998_vm3, 4294967295, %v2668_v38  ;;  %v56_v42 = vsel %vm52_vm10, %v49_v24, %v43_v6  ;;  %v53_v43 = vsel %vm52_vm10, %v47_v27, %v49_v24  ;;  %v54_v29 = vsel %vm52_vm10, %v45_v5, %v47_v27  ;;  %426 = vmatprep.subr.mxu0 %v358_v25  ;;  %vm2020_vm7 = vmand %vm2671_vm15, %vm2670_vm5 }
  0xb2   :  { %v2673_v48 = vsel %vm2020_vm7, 4294967295, %v2672_v48  ;;  %vm2030_vm1 = vmand %vm2675_vm2, %vm2674_vm13  ;;  %v73_v4 = vmul.f32 %v60_v10, %v56_v42  ;;  %v75_v31 = vmul.f32 %v68_v17, %v54_v29  ;;  %v76_v12 = vmul.f32 %v72_v23, %v53_v43 }
  0xb3   :  { %v2677_v13 = vsel %vm2030_vm1, 4294967295, %v2676_v13  ;;  %vm2678_vm10 = vcmp.lt.s32.totalorder %v1717_v35, %v1614_v53  ;;  %vm2679_vm2 = vcmp.ge.s32.totalorder %v1717_v35, %v1612_v2  ;;  %v2680_v34 = vmov 0 }
  0xb4   :  { %vm2049_vm5 = vmand %vm2679_vm2, %vm2678_vm10  ;;  %vm2682_vm15 = vcmp.lt.s32.totalorder %v1730_v39, %v1614_v53  ;;  %vm2683_vm13 = vcmp.ge.s32.totalorder %v1730_v39, %v1612_v2  ;;  %vm2686_vm10 = vcmp.lt.s32.totalorder %v1733_v40, %v1614_v53  ;;  %vm2687_vm2 = vcmp.ge.s32.totalorder %v1733_v40, %v1612_v2 }
  0xb5   :  { %v2681_v34 = vsel %vm2049_vm5, 4294967295, %v2680_v34  ;;  %vm2059_vm1 = vmand %vm2683_vm13, %vm2682_vm15  ;;  %vm2690_vm15 = vcmp.lt.s32.totalorder %v1736_v41, %v1614_v53  ;;  %vm2691_vm13 = vcmp.ge.s32.totalorder %v1736_v41, %v1612_v2  ;;  %v652_v10 = vadd.s32 328, %v1509_v16 }
  0xb6   :  { %v2685_v32 = vsel %vm2059_vm1, 4294967295, %v2684_v32  ;;  %vm2072_vm5 = vmand %vm2687_vm2, %vm2686_vm10  ;;  %v619_v17 = vadd.s32 64, %v1509_v16  ;;  %v667_v23 = vadd.s32 448, %v1509_v16  ;;  %vm2694_vm10 = vcmask 1043456  }
  0xb7   :  { %v2689_v37 = vsel %vm2072_vm5, 4294967295, %v2688_v37  ;;  %vm2082_vm1 = vmand %vm2691_vm13, %vm2690_vm15  ;;  %v357_v35 = vsel %vm2694_vm10, %v73_v4, %v312_v19  ;;  %vm2697_vm15 = vcmp.lt.s32.totalorder %v1751_v46, %v1614_v53  ;;  %vm2698_vm13 = vcmp.ge.s32.totalorder %v1751_v46, %v1612_v2 }
  0xb8   :  { %v2693_v55 = vsel %vm2082_vm1, 4294967295, %v2692_v55  ;;  %vm2695_vm2 = vmmov %vm2694_vm10  ;;  %v2699_v41 = vmov 0  ;;  %vm2701_vm7 = vcmp.lt.s32.totalorder %v1754_v47, %v1614_v53  ;;  %vm2702_vm10 = vcmp.ge.s32.totalorder %v1754_v47, %v1612_v2  ;;  %427 = vmatpush1.msra.mxu0 %v357_v35 }
  0xb9   :  { %v360_v39 = vsel %vm2695_vm2, %v76_v12, %v315_v60  ;;  %vm2696_vm5 = vmmov %vm2695_vm2  ;;  %v2703_v44 = vmov 0  ;;  %vm2705_vm2 = vcmp.lt.s32.totalorder %v1771_v51, %v1614_v53  ;;  %v2707_v46 = vmov 0 }
  0xba   :  { %v359_v40 = vsel %vm2696_vm5, %v75_v31, %v314_v28  ;;  %vm2100_vm1 = vmand %vm2698_vm13, %vm2697_vm15  ;;  %497 = vmatprep.subr.mxu1 %v360_v39  ;;  %vm2706_vm15 = vcmp.ge.s32.totalorder %v1771_v51, %v1612_v2  ;;  %v2711_v47 = vmov 0  ;;  %v634_v51 = vadd.s32 184, %v1509_v16 }
  0xbb   :  { %v2700_v41 = vsel %vm2100_vm1, 4294967295, %v2699_v41  ;;  %vm2110_vm3 = vmand %vm2702_vm10, %vm2701_vm7  ;;  %vm2709_vm7 = vcmp.lt.s32.totalorder %v1774_v52, %v1614_v53  ;;  %vm2710_vm10 = vcmp.ge.s32.totalorder %v1774_v52, %v1612_v2  ;;  %498 = vmatpush1.msra.mxu1 %v359_v40  ;;  %v2716_v52 = vmov 0 }
  0xbc   :  { %v2704_v44 = vsel %vm2110_vm3, 4294967295, %v2703_v44  ;;  %vm2122_vm13 = vmand %vm2706_vm15, %vm2705_vm2  ;;  %vm2713_vm15 = vcmask 293888   ;;  %vm2718_vm5 = vcmp.lt.s32.totalorder %v1788_v56, %v1614_v53  ;;  %vm2719_vm2 = vcmp.ge.s32.totalorder %v1788_v56, %v1612_v2 }
  0xbd   :  { %v2708_v46 = vsel %vm2122_vm13, 4294967295, %v2707_v46  ;;  %vm2132_vm3 = vmand %vm2710_vm10, %vm2709_vm7  ;;  %1207 = vmatmul.mubr.msk.f32.vlgmr.msra.gmra.mxu0 %vm2713_vm15, %v373_v33  ;;  %vm2714_vm7 = vcmp.lt.s32.totalorder %v1785_v54, %v1614_v53  ;;  %vm2715_vm10 = vcmp.ge.s32.totalorder %v1785_v54, %v1612_v2  ;;  %v2720_v59 = vmov 0 }
  0xbe   :  { %v2712_v47 = vsel %vm2132_vm3, 4294967295, %v2711_v47  ;;  %vm2150_vm3 = vmand %vm2715_vm10, %vm2714_vm7  ;;  %v651_v54 = vadd.s32 320, %v1509_v16  ;;  %v1402_v3 = vmov 1.0   ;;  %vm2727_vm13 = vcmp.lt.s32.totalorder %v1803_v20, %v1614_v53 }
  0xbf   :  { %v2717_v52 = vsel %vm2150_vm3, 4294967295, %v2716_v52  ;;  %vm2160_vm1 = vmand %vm2719_vm2, %vm2718_vm5  ;;  %1276 = vmatprep.subr.msk.mxu0 %vm1887_vm6, %v1402_v3  ;;  %vm2723_vm5 = vcmp.lt.s32.totalorder %v1800_v15, %v1614_v53  ;;  %vm2724_vm2 = vcmp.ge.s32.totalorder %v1800_v15, %v1612_v2  ;;  %v618_v15 = vadd.s32 56, %v1509_v16  ;;  %1311 = vmatprep.subr.msk.mxu1 %vm1916_vm9, %v1402_v3 }
  0xc0   :  { %v2721_v59 = vsel %vm2160_vm1, 4294967295, %v2720_v59  ;;  %vm2722_vm10 = vmmov %vm2713_vm15  ;;  %1277 = vmatpush3.msk.msra.mxu0 %vm1906_vm8, %v1402_v3  ;;  %vm2736_vm8 = vcmp.ge.s32.totalorder %v1976_v9, %v1612_v2  ;;  %vm750_vm9 = vcmp.lt.s32.totalorder %v619_v17, %v1614_v53  ;;  %v633_v22 = vadd.s32 176, %v1509_v16 }
  0xc1   :  { %1210 = vmatmul.mubr.msk.f32.vlgmr.msra.gmra.mxu1 %vm2722_vm10, %v373_v33  ;;  %vm2181_vm15 = vmand %vm2724_vm2, %vm2723_vm5  ;;  %vm2728_vm10 = vcmp.ge.s32.totalorder %v1803_v20, %v1612_v2  ;;  %vm2732_vm5 = vcmp.ge.s32.totalorder %v1806_v26, %v1612_v2  ;;  %1278 = vmatprep.subr.msk.mxu0 %vm1935_vm12, %v1402_v3  ;;  %vm2744_vm12 = vcmp.ge.s32.totalorder %v2003_v49, %v1612_v2  ;;  %v650_v0 = vadd.s32 312, %v1509_v16 }
  0xc2   :  { %vm2191_vm7 = vmand %vm2728_vm10, %vm2727_vm13  ;;  %vm2731_vm13 = vcmp.lt.s32.totalorder %v1806_v26, %v1614_v53  ;;  %vm2735_vm10 = vcmp.lt.s32.totalorder %v1976_v9, %v1614_v53  ;;  %v666_v26 = vadd.s32 440, %v1509_v16  ;;  %1312 = vmatpush3.msk.msra.mxu1 %vm1945_vm4, %v1402_v3  ;;  %1279 = vmatpush3.msk.msra.mxu0 %vm1957_vm11, %v1402_v3  ;;  %vm2752_vm4 = vcmp.ge.s32.totalorder %v652_v10, %v1612_v2 }
  0xc3   :  { %vm2211_vm2 = vmand %vm2732_vm5, %vm2731_vm13  ;;  %vm2739_vm13 = vcmp.lt.s32.totalorder %v1979_v18, %v1614_v53  ;;  %vm2740_vm5 = vcmp.ge.s32.totalorder %v1979_v18, %v1612_v2  ;;  %1313 = vmatprep.subr.msk.mxu1 %vm1967_vm14, %v1402_v3  ;;  %1280 = vmatprep.subr.msk.mxu0 %vm1988_vm0, %v1402_v3  ;;  %vm2760_vm11 = vcmp.ge.s32.totalorder %v667_v23, %v1612_v2  ;;  %v2761_v61 = vmov 0 }
  0xc4   :  { %vm2221_vm3 = vmand %vm2736_vm8, %vm2735_vm10  ;;  %vm2743_vm8 = vcmp.lt.s32.totalorder %v2003_v49, %v1614_v53  ;;  %v617_v1 = vadd.s32 48, %v1509_v16  ;;  %v2767_v11 = vmov 0  ;;  %v665_v63 = vadd.s32 432, %v1509_v16 }
  0xc5   :  { %vm2241_vm10 = vmand %vm2740_vm5, %vm2739_vm13  ;;  %vm2747_vm13 = vcmp.lt.s32.totalorder %v2006_v57, %v1614_v53  ;;  %vm2748_vm5 = vcmp.ge.s32.totalorder %v2006_v57, %v1612_v2  ;;  %v649_v62 = vadd.s32 304, %v1509_v16  ;;  %v2785_v9 = vmov 0 }
  0xc6   :  { %vm2251_vm6 = vmand %vm2744_vm12, %vm2743_vm8  ;;  %vm2751_vm12 = vcmp.lt.s32.totalorder %v652_v10, %v1614_v53  ;;  %v616_v18 = vadd.s32 40, %v1509_v16  ;;  %v664_v24 = vadd.s32 424, %v1509_v16  ;;  %v631_v25 = vadd.s32 160, %v1509_v16 }
  0xc7   :  { %vm2270_vm8 = vmand %vm2748_vm5, %vm2747_vm13  ;;  %vm2755_vm13 = vnez %v2669_v38  ;;  %vm780_vm0 = vcmp.lt.s32.totalorder %v649_v62, %v1614_v53  ;;  %v648_v38 = vadd.s32 296, %v1509_v16  ;;  %v2805_v49 = vmov 0 }
  0xc8   :  { %vm2278_vm1 = vmand %vm2752_vm4, %vm2751_vm12  ;;  %1314 = vmatpush3.msk.msra.mxu1 %vm2755_vm13, %v1402_v3  ;;  %vm2756_vm4 = vcmp.ge.s32.totalorder %v619_v17, %v1612_v2  ;;  %vm2759_vm12 = vcmp.lt.s32.totalorder %v667_v23, %v1614_v53  ;;  %vm763_vm13 = vcmp.lt.s32.totalorder %v632_v36, %v1614_v53  ;;  %v615_v57 = vadd.s32 32, %v1509_v16 }
  0xc9   :  { %vm2295_vm5 = vmand %vm2756_vm4, %vm750_vm9  ;;  %vm2763_vm9 = vnez %v2673_v48  ;;  %vm2764_vm4 = vnez %v2677_v13  ;;  %v2808_v28 = vmov 0  ;;  %v663_v42 = vadd.s32 416, %v1509_v16 }
  0xca   :  { %v2758_v8 = vsel %vm2295_vm5, 4294967295, %v2757_v8  ;;  %vm2303_vm14 = vmand %vm2760_vm11, %vm2759_vm12  ;;  %1281 = vmatpush3.msk.msra.mxu0 %vm2763_vm9, %v1402_v3  ;;  %1315 = vmatprep.subr.msk.mxu1 %vm2764_vm4, %v1402_v3  ;;  %vm2765_vm5 = vcmp.lt.s32.totalorder %v634_v51, %v1614_v53  ;;  %vm2766_vm11 = vcmp.ge.s32.totalorder %v634_v51, %v1612_v2  ;;  %vm2769_vm9 = vnez %v2681_v34 }
  0xcb   :  { %v2762_v61 = vsel %vm2303_vm14, 4294967295, %v2761_v61  ;;  %vm2320_vm12 = vmand %vm2766_vm11, %vm2765_vm5  ;;  %1282 = vmatprep.subr.msk.mxu0 %vm2769_vm9, %v1402_v3  ;;  %vm2770_vm4 = vnez %v2685_v32  ;;  %vm2771_vm14 = vcmp.lt.s32.totalorder %v651_v54, %v1614_v53  ;;  %vm2772_vm5 = vcmp.ge.s32.totalorder %v651_v54, %v1612_v2 }
  0xcc   :  { %v2768_v11 = vsel %vm2320_vm12, 4294967295, %v2767_v11  ;;  %1316 = vmatpush3.msk.msra.mxu1 %vm2770_vm4, %v1402_v3  ;;  %vm2337_vm11 = vmand %vm2772_vm5, %vm2771_vm14  ;;  %vm2775_vm9 = vnez %v2689_v37  ;;  %vm2776_vm4 = vnez %v2693_v55  ;;  %vm2777_vm12 = vcmp.lt.s32.totalorder %v618_v15, %v1614_v53 }
  0xcd   :  { %v2774_v14 = vsel %vm2337_vm11, 4294967295, %v2773_v14  ;;  %1283 = vmatpush3.msk.msra.mxu0 %vm2775_vm9, %v1402_v3  ;;  %1317 = vmatprep.subr.msk.mxu1 %vm2776_vm4, %v1402_v3  ;;  %vm2778_vm14 = vcmp.ge.s32.totalorder %v618_v15, %v1612_v2  ;;  %vm2781_vm9 = vnez %v2700_v41  ;;  %vm2782_vm4 = vnez %v2704_v44  ;;  %v378_v44 = vpop.permute.xlu0 %377 }
  0xce   :  { %vm2354_vm5 = vmand %vm2778_vm14, %vm2777_vm12  ;;  %1284 = vmatprep.subr.msk.mxu0 %vm2781_vm9, %v1402_v3  ;;  %1318 = vmatpush3.msk.msra.mxu1 %vm2782_vm4, %v1402_v3  ;;  %vm2783_vm11 = vcmp.lt.s32.totalorder %v666_v26, %v1614_v53  ;;  %vm2784_vm12 = vcmp.ge.s32.totalorder %v666_v26, %v1612_v2  ;;  %vm2787_vm9 = vnez %v2708_v46  ;;  %vm2788_vm4 = vnez %v2712_v47 }
  0xcf   :  { %v2780_v50 = vsel %vm2354_vm5, 4294967295, %v2779_v50  ;;  %vm2371_vm14 = vmand %vm2784_vm12, %vm2783_vm11  ;;  %1285 = vmatpush3.msk.msra.mxu0 %vm2787_vm9, %v1402_v3  ;;  %1319 = vmatprep.subr.msk.mxu1 %vm2788_vm4, %v1402_v3  ;;  %vm2789_vm5 = vcmp.lt.s32.totalorder %v633_v22, %v1614_v53  ;;  %vm2790_vm11 = vcmp.ge.s32.totalorder %v633_v22, %v1612_v2  ;;  %vm2793_vm9 = vnez %v2717_v52 }
  0xd0   :  { %v2786_v9 = vsel %vm2371_vm14, 4294967295, %v2785_v9  ;;  %vm2388_vm12 = vmand %vm2790_vm11, %vm2789_vm5  ;;  %1286 = vmatprep.subr.msk.mxu0 %vm2793_vm9, %v1402_v3  ;;  %vm2794_vm4 = vnez %v2721_v59  ;;  %vm2795_vm14 = vcmp.lt.s32.totalorder %v650_v0, %v1614_v53  ;;  %vm2796_vm5 = vcmp.ge.s32.totalorder %v650_v0, %v1612_v2 }
  0xd1   :  { %1320 = vmatpush3.msk.msra.mxu1 %vm2794_vm4, %v1402_v3  ;;  %vm2405_vm11 = vmand %vm2796_vm5, %vm2795_vm14  ;;  %1287 = vmatpush3.msk.msra.mxu0 %vm2181_vm15, %v1402_v3  ;;  %vm2799_vm9 = vcmp.lt.s32.totalorder %v617_v1, %v1614_v53  ;;  %vm2800_vm14 = vcmp.ge.s32.totalorder %v617_v1, %v1612_v2  ;;  %vm2803_vm15 = vcmp.lt.s32.totalorder %v665_v63, %v1614_v53  ;;  %v2811_v43 = vmov 0 }
  0xd2   :  { %1321 = vmatprep.subr.msk.mxu1 %vm2191_vm7, %v1402_v3  ;;  %vm2422_vm4 = vmand %vm2800_vm14, %vm2799_vm9  ;;  %1288 = vmatprep.subr.msk.mxu0 %vm2211_vm2, %v1402_v3  ;;  %vm2804_vm7 = vcmp.ge.s32.totalorder %v665_v63, %v1612_v2  ;;  %vm681_vm14 = vcmp.ge.s32.totalorder %v616_v18, %v1612_v2  ;;  %vm747_vm5 = vcmp.lt.s32.totalorder %v616_v18, %v1614_v53  ;;  %v2815_v29 = vmov 0 }
  0xd3   :  { %1322 = vmatpush3.msk.msra.mxu1 %vm2221_vm3, %v1402_v3  ;;  %vm2439_vm9 = vmand %vm2804_vm7, %vm2803_vm15  ;;  %1289 = vmatpush3.msk.msra.mxu0 %vm2241_vm10, %v1402_v3  ;;  %vm2807_vm3 = vcmp.ge.s32.totalorder %v632_v36, %v1612_v2  ;;  %vm795_vm7 = vcmp.lt.s32.totalorder %v664_v24, %v1614_v53  ;;  %vm2813_vm15 = vnez %v2758_v8  ;;  %v630_v13 = vadd.s32 152, %v1509_v16 }
  0xd4   :  { %v2806_v49 = vsel %vm2439_vm9, 4294967295, %v2805_v49  ;;  %1323 = vmatprep.subr.msk.mxu1 %vm2251_vm6, %v1402_v3  ;;  %vm2456_vm2 = vmand %vm2807_vm3, %vm763_vm13  ;;  %1290 = vmatprep.subr.msk.mxu0 %vm2270_vm8, %v1402_v3  ;;  %vm2810_vm6 = vcmp.ge.s32.totalorder %v649_v62, %v1612_v2  ;;  %vm696_vm13 = vcmp.ge.s32.totalorder %v631_v25, %v1612_v2  ;;  %vm762_vm3 = vcmp.lt.s32.totalorder %v631_v25, %v1614_v53 }
  0xd5   :  { %v2809_v28 = vsel %vm2456_vm2, 4294967295, %v2808_v28  ;;  %1324 = vmatpush3.msk.msra.mxu1 %vm2278_vm1, %v1402_v3  ;;  %vm2473_vm10 = vmand %vm2810_vm6, %vm780_vm0  ;;  %1291 = vmatpush3.msk.msra.mxu0 %vm2813_vm15, %v1402_v3  ;;  %vm2814_vm8 = vnez %v2762_v61  ;;  %vm713_vm0 = vcmp.ge.s32.totalorder %v648_v38, %v1612_v2  ;;  %vm779_vm6 = vcmp.lt.s32.totalorder %v648_v38, %v1614_v53 }
  0xd6   :  { %v2812_v43 = vsel %vm2473_vm10, 4294967295, %v2811_v43  ;;  %1325 = vmatprep.subr.msk.mxu1 %vm2814_vm8, %v1402_v3  ;;  %vm2489_vm1 = vmand %vm681_vm14, %vm747_vm5  ;;  %vm2817_vm10 = vnez %v2768_v11  ;;  %vm2818_vm15 = vnez %v2774_v14  ;;  %vm2819_vm8 = vcmp.ge.s32.totalorder %v664_v24, %v1612_v2 }
  0xd7   :  { %v2816_v29 = vsel %vm2489_vm1, 4294967295, %v2815_v29  ;;  %1292 = vmatprep.subr.msk.mxu0 %vm2817_vm10, %v1402_v3  ;;  %1326 = vmatpush3.msk.msra.mxu1 %vm2818_vm15, %v1402_v3  ;;  %vm2503_vm2 = vmand %vm2819_vm8, %vm795_vm7  ;;  %vm680_vm5 = vcmp.ge.s32.totalorder %v615_v57, %v1612_v2  ;;  %vm746_vm14 = vcmp.lt.s32.totalorder %v615_v57, %v1614_v53  ;;  %vm2822_vm1 = vnez %v2780_v50 }
  0xd8   :  { %1293 = vmatpush3.msk.msra.mxu0 %vm2822_vm1, %v1402_v3  ;;  %vm2823_vm10 = vnez %v2786_v9  ;;  %vm826_vm9 = vmand %vm696_vm13, %vm762_vm3  ;;  %vm728_vm15 = vcmp.ge.s32.totalorder %v663_v42, %v1612_v2  ;;  %vm794_vm7 = vcmp.lt.s32.totalorder %v663_v42, %v1614_v53  ;;  %vm2824_vm13 = vnez %v2806_v49 }
  0xd9   :  { %1327 = vmatprep.subr.msk.mxu1 %vm2823_vm10, %v1402_v3  ;;  %1294 = vmatprep.subr.msk.mxu0 %vm2388_vm12, %v1402_v3  ;;  %vm843_vm8 = vmand %vm713_vm0, %vm779_vm6  ;;  %vm2825_vm1 = vnez %v2809_v28  ;;  %vm2826_vm12 = vnez %v2812_v43  ;;  %v647_v60 = vadd.s32 288, %v1509_v16  ;;  %v614_v4 = vadd.s32 24, %v1509_v16 }
  0xda   :  { %1328 = vmatpush3.msk.msra.mxu1 %vm2405_vm11, %v1402_v3  ;;  %1295 = vmatpush3.msk.msra.mxu0 %vm2422_vm4, %v1402_v3  ;;  %vm810_vm3 = vmand %vm680_vm5, %vm746_vm14  ;;  %vm2827_vm11 = vnez %v2816_v29  ;;  %v662_v31 = vadd.s32 408, %v1509_v16  ;;  %vm695_vm4 = vcmp.ge.s32.totalorder %v630_v13, %v1612_v2  ;;  %v629_v12 = vadd.s32 144, %v1509_v16 }
  0xdb   :  { %1329 = vmatprep.subr.msk.mxu1 %vm2824_vm13, %v1402_v3  ;;  %1296 = vmatprep.subr.msk.mxu0 %vm2825_vm1, %v1402_v3  ;;  %vm858_vm10 = vmand %vm728_vm15, %vm794_vm7  ;;  %vm778_vm0 = vcmp.lt.s32.totalorder %v647_v60, %v1614_v53  ;;  %vm679_vm5 = vcmp.ge.s32.totalorder %v614_v4, %v1612_v2  ;;  %vm745_vm14 = vcmp.lt.s32.totalorder %v614_v4, %v1614_v53  ;;  %v646_v34 = vadd.s32 280, %v1509_v16 }
  0xdc   :  { %1330 = vmatpush3.msk.msra.mxu1 %vm2826_vm12, %v1402_v3  ;;  %1297 = vmatpush3.msk.msra.mxu0 %vm2827_vm11, %v1402_v3  ;;  %vm727_vm15 = vcmp.ge.s32.totalorder %v662_v31, %v1612_v2  ;;  %vm793_vm7 = vcmp.lt.s32.totalorder %v662_v31, %v1614_v53  ;;  %v613_v32 = vadd.s32 16, %v1509_v16  ;;  %v661_v33 = vadd.s32 400, %v1509_v16  ;;  %vm809_vm13 = vmand %vm679_vm5, %vm745_vm14 }
  0xdd   :  { %1331 = vmatprep.subr.msk.mxu1 %vm2503_vm2, %v1402_v3  ;;  %1298 = vmatprep.subr.msk.mxu0 %vm826_vm9, %v1402_v3  ;;  %vm761_vm2 = vcmp.lt.s32.totalorder %v630_v13, %v1614_v53  ;;  %vm712_vm9 = vcmp.ge.s32.totalorder %v647_v60, %v1612_v2  ;;  %v628_v37 = vadd.s32 136, %v1509_v16  ;;  %v645_v55 = vadd.s32 272, %v1509_v16 }
  0xde   :  { %1332 = vmatpush3.msk.msra.mxu1 %vm843_vm8, %v1402_v3  ;;  %1299 = vmatpush3.msk.msra.mxu0 %vm810_vm3, %v1402_v3  ;;  %vm825_vm6 = vmand %vm695_vm4, %vm761_vm2  ;;  %v612_v10 = vadd.s32 8, %v1509_v16  ;;  %v660_v17 = vadd.s32 392, %v1509_v16  ;;  %vm694_vm1 = vcmp.ge.s32.totalorder %v629_v12, %v1612_v2  ;;  %vm760_vm12 = vcmp.lt.s32.totalorder %v629_v12, %v1614_v53 }
  0xdf   :  { %1333 = vmatprep.subr.msk.mxu1 %vm858_vm10, %v1402_v3  ;;  %1300 = vmatprep.subr.msk.mxu0 %vm825_vm6, %v1402_v3  ;;  %vm842_vm8 = vmand %vm712_vm9, %vm778_vm0  ;;  %vm711_vm10 = vcmp.ge.s32.totalorder %v646_v34, %v1612_v2  ;;  %vm777_vm11 = vcmp.lt.s32.totalorder %v646_v34, %v1614_v53  ;;  %vm678_vm2 = vcmp.ge.s32.totalorder %v613_v32, %v1612_v2  ;;  %v627_v23 = vadd.s32 128, %v1509_v16 }
  0xe0   :  { %1334 = vmatpush3.msk.msra.mxu1 %vm842_vm8, %v1402_v3  ;;  %1301 = vmatpush3.msk.msra.mxu0 %vm809_vm13, %v1402_v3  ;;  %vm857_vm3 = vmand %vm727_vm15, %vm793_vm7  ;;  %vm744_vm9 = vcmp.lt.s32.totalorder %v613_v32, %v1614_v53  ;;  %vm726_vm0 = vcmp.ge.s32.totalorder %v661_v33, %v1612_v2  ;;  %vm792_vm6 = vcmp.lt.s32.totalorder %v661_v33, %v1614_v53  ;;  %v644_v35 = vadd.s32 264, %v1509_v16 }
  0xe1   :  { %1335 = vmatprep.subr.msk.mxu1 %vm857_vm3, %v1402_v3  ;;  %vm824_vm4 = vmand %vm694_vm1, %vm760_vm12  ;;  %vm693_vm14 = vcmp.ge.s32.totalorder %v628_v37, %v1612_v2  ;;  %vm759_vm15 = vcmp.lt.s32.totalorder %v628_v37, %v1614_v53  ;;  %vm710_vm8 = vcmp.ge.s32.totalorder %v645_v55, %v1612_v2  ;;  %vm776_vm13 = vcmp.lt.s32.totalorder %v645_v55, %v1614_v53 }
  0xe2   :  { %1302 = vmatprep.subr.msk.mxu0 %vm824_vm4, %v1402_v3  ;;  %vm841_vm5 = vmand %vm711_vm10, %vm777_vm11  ;;  %vm677_vm1 = vcmp.ge.s32.totalorder %v612_v10, %v1612_v2  ;;  %vm743_vm12 = vcmp.lt.s32.totalorder %v612_v10, %v1614_v53  ;;  %vm725_vm11 = vcmp.ge.s32.totalorder %v660_v17, %v1612_v2  ;;  %vm791_vm4 = vcmp.lt.s32.totalorder %v660_v17, %v1614_v53 }
  0xe3   :  { %1336 = vmatpush3.msk.msra.mxu1 %vm841_vm5, %v1402_v3  ;;  %vm808_vm7 = vmand %vm678_vm2, %vm744_vm9  ;;  %v659_v39 = vadd.s32 384, %v1509_v16  ;;  %vm692_vm9 = vcmp.ge.s32.totalorder %v627_v23, %v1612_v2  ;;  %vm709_vm5 = vcmp.ge.s32.totalorder %v644_v35, %v1612_v2  ;;  %v643_v40 = vadd.s32 256, %v1509_v16 }
  0xe4   :  { %1303 = vmatpush3.msk.msra.mxu0 %vm808_vm7, %v1402_v3  ;;  %vm856_vm3 = vmand %vm726_vm0, %vm792_vm6  ;;  %vm758_vm0 = vcmp.lt.s32.totalorder %v627_v23, %v1614_v53  ;;  %vm676_vm7 = vcmp.ge.s32.totalorder %v1509_v16, %v1612_v2  ;;  %v2828_v41 = vmov 0.0   ;;  %v1403_v1 = vmov 1966171168  }
  0xe5   :  { %1337 = vmatprep.subr.msk.mxu1 %vm856_vm3, %v1402_v3  ;;  %vm823_vm10 = vmand %vm693_vm14, %vm759_vm15  ;;  %vm775_vm14 = vcmp.lt.s32.totalorder %v644_v35, %v1614_v53  ;;  %vm724_vm3 = vcmp.ge.s32.totalorder %v659_v39, %v1612_v2  ;;  %v583_v11 = vunpack.c.l.s4 %v1403_v1  ;;  %v2829_v34 = vlaneseq }
  0xe6   :  { %1304 = vmatprep.subr.msk.mxu0 %vm823_vm10, %v1402_v3  ;;  %vm840_vm2 = vmand %vm710_vm8, %vm776_vm13  ;;  %vm742_vm8 = vcmp.lt.s32.totalorder %v1509_v16, %v1614_v53  ;;  %vm708_vm10 = vcmp.ge.s32.totalorder %v643_v40, %v1612_v2 }
  0xe7   :  { %1338 = vmatpush3.msk.msra.mxu1 %vm840_vm2, %v1402_v3  ;;  %vm807_vm6 = vmand %vm677_vm1, %vm743_vm12  ;;  %vm790_vm1 = vcmp.lt.s32.totalorder %v659_v39, %v1614_v53  ;;  %v584_v24 = vunpack.c.0.s8 %v583_v11 }
  0xe8   :  { %1305 = vmatpush3.msk.msra.mxu0 %vm807_vm6, %v1402_v3  ;;  %vm855_vm15 = vmand %vm725_vm11, %vm791_vm4  ;;  %vm774_vm11 = vcmp.lt.s32.totalorder %v643_v40, %v1614_v53  ;;  %v546_v53 = vpop.permute.xlu0 %545  ;;  %vm1404_vm6 = vmmov 0  }
  0xe9   :  { %1339 = vmatprep.subr.msk.mxu1 %vm855_vm15, %v1402_v3  ;;  %vm822_vm13 = vmand %vm692_vm9, %vm758_vm0  ;;  %v587_v28 = vsub.s32 %v584_v24, %v1509_v16  ;;  %vm607_vm0 = vcmp.lt.s32.totalorder %v2829_v34, 512  ;;  %v1074_v16 = vld [vmem:[%s2633_s4] sm:$0xff] }
  0xea   :  { %1306 = vmatprep.subr.msk.mxu0 %vm822_vm13, %v1402_v3  ;;  %vm839_vm12 = vmand %vm709_vm5, %vm775_vm14  ;;  %vm1107_vm5 = vcmask 64512   ;;  %vm1181_vm14 = vcmask 17408  }
  0xeb   :  { %1340 = vmatpush3.msk.msra.mxu1 %vm839_vm12, %v1402_v3  ;;  %vm806_vm4 = vmand %vm676_vm7, %vm742_vm8 }
  0xec   :  { %1307 = vmatpush3.msk.msra.mxu0 %vm806_vm4, %v1402_v3  ;;  %vm854_vm2 = vmand %vm724_vm3, %vm790_vm1 }
  0xed   :  { %1341 = vmatprep.subr.msk.mxu1 %vm854_vm2, %v1402_v3  ;;  %vm838_vm9 = vmand %vm708_vm10, %vm774_vm11  ;;  %1348 = vmatprep.subr.mxu0 %v2828_v41 }
  0xee   :  { %1342 = vmatpush3.msk.msra.mxu1 %vm838_vm9, %v1402_v3 }
 0x17d   :  { %v462_v46 = vpop.f32.mrf.mxu0 }
 0x17e   :  { %v463_v47 = vadd.f32 %v462_v46, %v378_v44 }
 0x17f   :  { %v464_v52 = vpop.f32.mrf.mxu0 }
 0x180   :  { %v538_v59 = vmax.f32 %v463_v47, 0.0  ;;  %v465_v54 = vadd.f32 %v464_v52, %v378_v44 }
 0x181   :  { %v533_v51 = vpop.f32.mrf.mxu1 }
 0x182   :  { %v534_v2 = vadd.f32 %v533_v51, %v378_v44  ;;  %v539_v20 = vmax.f32 %v465_v54, 0.0  ;;  %v548_v6 = vmul.f32 %v546_v53, %v538_v59 }
 0x183   :  { %v535_v56 = vpop.f32.mrf.mxu1 }
 0x184   :  { %v540_v5 = vmax.f32 %v534_v2, 0.0  ;;  %v536_v15 = vadd.f32 %v535_v56, %v378_v44  ;;  %v549_v21 = vmul.f32 %v546_v53, %v539_v20  ;;  %v552_v22 = vrot.slane %v548_v6, 4  ;;  %998 = vmatprep.mubr.f32.mxu0 %v539_v20 }
 0x185   :  { %999 = vmatmul.mubr.f32.vlgmr.msra.gmra.mxu0 %v538_v59 }
 0x186   :  { %v541_v26 = vmax.f32 %v536_v15, 0.0  ;;  %v550_v7 = vmul.f32 %v546_v53, %v540_v5  ;;  %v553_v58 = vadd.f32 %v552_v22, %v548_v6  ;;  %v558_v0 = vrot.slane %v549_v21, 4  ;;  %1349 = vmatpush3.msra.mxu0 %v1074_v16  ;;  %1350 = vmatprep.mubr.msk.f32.mxu0 %vm1404_vm6, %v2828_v41 }
 0x188   :  { %v551_v3 = vmul.f32 %v546_v53, %v541_v26  ;;  %v564_v45 = vrot.slane %v550_v7, 4  ;;  %1068 = vmatprep.mubr.f32.mxu1 %v541_v26  ;;  %v554_v63 = vrot.slane %v553_v58, 2  ;;  %v559_v14 = vadd.f32 %v558_v0, %v549_v21 }
 0x189   :  { %1069 = vmatmul.mubr.f32.vlgmr.msra.gmra.mxu1 %v540_v5 }
 0x18a   :  { %v565_v8 = vadd.f32 %v564_v45, %v550_v7  ;;  %v570_v61 = vrot.slane %v551_v3, 4  ;;  %v555_v62 = vadd.f32 %v554_v63, %v553_v58  ;;  %v560_v9 = vrot.slane %v559_v14, 2 }
 0x18c   :  { %v566_v36 = vrot.slane %v565_v8, 2  ;;  %v571_v50 = vadd.f32 %v570_v61, %v551_v3  ;;  %v556_v27 = vrot.slane %v555_v62, 1  ;;  %v561_v25 = vadd.f32 %v560_v9, %v559_v14 }
 0x18e   :  { %v567_v18 = vadd.f32 %v566_v36, %v565_v8  ;;  %v572_v19 = vrot.slane %v571_v50, 2  ;;  %v562_v49 = vrot.slane %v561_v25, 1  ;;  %v557_v42 = vadd.f32 %v556_v27, %v555_v62 }
 0x190   :  { %v568_v30 = vrot.slane %v567_v18, 1  ;;  %v573_v38 = vadd.f32 %v572_v19, %v571_v50  ;;  %v563_v43 = vadd.f32 %v562_v49, %v561_v25 }
 0x192   :  { %v574_v57 = vrot.slane %v573_v38, 1  ;;  %v569_v29 = vadd.f32 %v568_v30, %v567_v18  ;;  %v580_v13 = vcombine.low %v557_v42, %v563_v43 }
 0x194   :  { %v575_v48 = vadd.f32 %v574_v57, %v573_v38  ;;  %v588_v4 = vrot.slane %v580_v13, %v587_v28 }
 0x196   :  { %v581_v60 = vcombine.low %v569_v29, %v575_v48 }
 0x198   :  { %v595_v31 = vrot.slane %v581_v60, %v587_v28 }
 0x19a   :  { %v596_v12 = vcombine.low %v588_v4, %v595_v31 }
 0x19c   :  { %v603_v32 = vrot.slane %v596_v12, %v587_v28 }
 0x19e   :  { %609 = vst.msk [vmem:[%s2636_s7] sm:$0xf] %vm607_vm0, %v603_v32  ;;  %s1405_s7 = smov [#allocation2]  }
 0x19f   :  { %s1189_s10 = sshll.u32 %s1405_s7, 4  ;;  %s1190_s10 = int_to_ptr.vmem [resolvable:$true] %s1189_s10 }
 0x1a0   :  { %s1370_s4 = scalar_lea.vmem %s1190_s10, 32  ;;  %p1375_p1 = scmp.lt.s32.totalorder %s1190_s10, %s1190_s10 }
 0x1a1   :  { %p1371_p0 = scmp.ne.s32.totalorder %s1190_s10, %s1370_s4  ;;  %p1376_p2 = scmp.lt.s32.totalorder %s1370_s4, %s1370_s4 }
 0x1a3   :  { %p1377_p3 = por %p1376_p2, %p1375_p1 }
 0x1a5   :  { %p1378_p4 = pnand %p1377_p3, %p1371_p0 }
 0x245   :  { %v1308_v33 = vpop.f32.mrf.mxu0 }
 0x247   :  { %v1309_v55 = vpop.f32.mrf.mxu0 }
 0x248   :  { %v1310_v10 = vadd.f32 %v1309_v55, %v1308_v33 }
 0x249   :  { %v1343_v37 = vpop.f32.mrf.mxu1 }
 0x24b   :  { %v1344_v17 = vpop.f32.mrf.mxu1 }
 0x24c   :  { %v1345_v23 = vadd.f32 %v1344_v17, %v1343_v37 }
 0x24e   :  { %v1071_v35 = vadd.f32 %v1345_v23, %v1310_v10 }
 0x250   :  { %1075 = vxpose.xlu1.b32.start.end [1/1] (short) (narrow) %v1071_v35, 8 }
 0x2cc   :  { %v1091_v39 = vpop.trf.xlu1 }
 0x2cd   :  { %1351 = vmatmul.mubr.msk.f32.vlgmr.msra.gmra.mxu0 %vm1107_vm5, %v1091_v39 }
 0x38d   :  { %v1177_v40 = vpop.f32.mrf.mxu0 }
 0x38e   :  { %1182 = vst.msk [vmem:[#allocation2] sm:$0x3] %vm1181_vm14, %v1177_v40 }
 0x38f   :  { %v1352_v44 = vpop.f32.mrf.mxu0 }
 0x390   :  { %1381 = shalt.err (!%p1378_p4)
}
 0x391   :  { %1192 = dma.vmem_to_hbm [thread:$0]  %s1190_s10, 32, %s2635_s6, [#allocation3]  }
 0x392   :  { %1390 = dma.done.wait [#allocation3], 32  }
 0x393   :  { %1391 = vsyncadd [#allocation3], 4294967264 }
 0x394   :  { %1200 = vsyncpa [#allocation3], 1 }

</bundles_post_ra>
